<compile_context>
chip_gen: v7x
topology: tpu7x:2x2x1
jax: 0.10.0
libtpu: 0.0.40
codegen_flags: <defaults>
</compile_context>

<pallas_src>
import functools

import jax
import jax.numpy as jnp
from jax.experimental import pallas as pl
from jax.experimental.pallas import tpu as pltpu

# ---------------- small, deterministic config ----------------
BATCH = 2
SEQ = 8
HIDDEN = 32
NUM_HEADS = 2
Q_LORA_RANK = 16
KV_LORA_RANK = 16
QK_NOPE_HEAD_DIM = 16
QK_ROPE_HEAD_DIM = 8
V_HEAD_DIM = 16
Q_HEAD_DIM = QK_NOPE_HEAD_DIM + QK_ROPE_HEAD_DIM  # 24
ROPE_THETA = 10000.0
RMS_EPS = 1e-6
SOFTMAX_SCALE = Q_HEAD_DIM ** -0.5
# attention_bias=False, attention_dropout=0.0, not training, no mask, no cache.

# Interleave permutation used by apply_rotary_pos_emb:
# view(d//2, 2).transpose(-1,-2).reshape(d)  ->  [0,2,4,...,1,3,5,...]
_ROPE_PERM = jnp.arange(QK_ROPE_HEAD_DIM).reshape(QK_ROPE_HEAD_DIM // 2, 2).T.reshape(-1)


# ---------------- in-kernel helpers ----------------
def _rms_scale(x, w, eps):
    """RMSNorm: w * x / rms(x); statistics in f32 (matches the PyTorch module)."""
    xf = x.astype(jnp.float32)
    var = jnp.mean(xf * xf, axis=-1, keepdims=True)
    return w * (xf * jax.lax.rsqrt(var + eps))


def _rope_apply(x, cos, sin_signed):
    """x*cos + rotate_half(x)*sin with the +/- sign pre-folded into sin_signed.

    rotate_half then reduces to a swap of the two halves along the minor axis
    (production form: pltpu.roll(x, shift=d//2, axis=-1) on the XLU slot).
    Works for 2-D (S, d) and 3-D (NH, S, d) inputs; cos/sin are (S, d).
    """
    d = x.shape[-1]
    swapped = jnp.concatenate([x[..., d // 2:], x[..., :d // 2]], axis=-1)
    return x * cos + swapped * sin_signed


# ---------------- the fused MLA kernel ----------------
def _mla_fused_kernel(
    x_ref, cs_ref,
    wqa_ref, qln_ref, wqabs_ref, wqpe_ref,
    wkvc_ref, wkpe_ref, kvln_ref, wvo_ref,
    o_ref, *, compute_dtype, approx_recip, eps,
):
    f32 = jnp.float32
    cd = compute_dtype

    S = x_ref.shape[0]
    NH, RQ, RKV = wqabs_ref.shape
    DR = wqpe_ref.shape[2]

    x = x_ref[...].astype(cd)                 # (S, HIDDEN) activation cast (cheap, in vregs)
    cos = cs_ref[:, :DR]                       # (S, ROPE)  f32
    sin_signed = cs_ref[:, DR:]                # (S, ROPE)  f32, rotate-half sign folded in

    # ---- Q latent path ----
    q_a = jnp.dot(x, wqa_ref[...], preferred_element_type=f32)          # (S, Rq)
    q_a = _rms_scale(q_a, qln_ref[...], eps)                             # f32
    q_a3 = jnp.broadcast_to(q_a.astype(cd)[None], (NH, S, RQ))           # heads as batch dim

    # absorbed q_nope: q_abs_h = q_a_n @ (scale * W_qn_h @ W_kn_h^T)      (NH, S, Rkv)
    q_abs = jnp.einsum("hsr,hrk->hsk", q_a3, wqabs_ref[...],
                       preferred_element_type=f32)
    # rope part of q (scale + interleave permutation folded into the weight)
    q_pe = jnp.einsum("hsr,hrd->hsd", q_a3, wqpe_ref[...],
                      preferred_element_type=f32)                         # (NH, S, ROPE)
    q_pe = _rope_apply(q_pe, cos, sin_signed)                             # f32

    # ---- shared latent K/V path (MQA-style; never expanded per head) ----
    c_kv = jnp.dot(x, wkvc_ref[...], preferred_element_type=f32)          # (S, Rkv)
    k_pe = jnp.dot(x, wkpe_ref[...], preferred_element_type=f32)          # (S, ROPE) — NOT normed
    c_kv = _rms_scale(c_kv, kvln_ref[...], eps)                           # (S, Rkv) f32
    k_pe = _rope_apply(k_pe, cos, sin_signed)                             # (S, ROPE) f32

    # pack nope+rope contributions along ONE contraction dim -> single score matmul
    q_full = jnp.concatenate([q_abs, q_pe], axis=-1).astype(cd)           # (NH, S, Rkv+ROPE)
    k_full = jnp.concatenate([c_kv, k_pe], axis=-1).astype(cd)            # (S, Rkv+ROPE) shared
    k_full = jnp.broadcast_to(k_full[None], (NH, S, RKV + DR))

    s = jnp.einsum("hqd,hkd->hqk", q_full, k_full,
                   preferred_element_type=f32)                             # (NH, S, S)

    # softmax stats in f32 (v5e has no bf16 VPU/EUP)
    m = jnp.max(s, axis=-1, keepdims=True)
    p = jnp.exp(s - m)
    l = jnp.sum(p, axis=-1, keepdims=True)

    # attention in the latent space: V == normalized c_kv shared across heads
    v3 = jnp.broadcast_to(c_kv.astype(cd)[None], (NH, S, RKV))
    o_lat = jnp.einsum("hqk,hkr->hqr", p.astype(cd), v3,
                       preferred_element_type=f32)                         # (NH, S, Rkv)
    o_lat = o_lat * pl.reciprocal(l, approx=approx_recip)

    # fold v_proj and o_proj:  out = sum_h  o_lat_h @ (W_v_h @ W_o_h)
    out3 = jnp.einsum("hqr,hrd->hqd", o_lat.astype(cd), wvo_ref[...],
                      preferred_element_type=f32)                          # (NH, S, HIDDEN)
    o_ref[...] = jnp.sum(out3, axis=0).astype(o_ref.dtype)


# ---------------- RoPE table (plain JAX; tiny, built once) ----------------
def rotary_cos_sin(seq_len, dim=QK_ROPE_HEAD_DIM, base=ROPE_THETA):
    inv_freq = 1.0 / (base ** (jnp.arange(0, dim, 2, dtype=jnp.float32) / dim))
    t = jnp.arange(seq_len, dtype=jnp.float32)
    freqs = jnp.outer(t, inv_freq)
    emb = jnp.concatenate([freqs, freqs], axis=-1)
    return jnp.cos(emb), jnp.sin(emb)  # (seq, dim)


# ---------------- parameters ----------------
def init_params(key):
    ks = jax.random.split(key, 5)

    def w(k, shape):
        return jax.random.normal(k, shape, jnp.float32) * 0.05

    return dict(
        q_a=w(ks[0], (HIDDEN, Q_LORA_RANK)),
        q_a_ln=jnp.ones((1, Q_LORA_RANK), jnp.float32),
        q_b=w(ks[1], (Q_LORA_RANK, NUM_HEADS * Q_HEAD_DIM)),
        kv_a=w(ks[2], (HIDDEN, KV_LORA_RANK + QK_ROPE_HEAD_DIM)),
        kv_a_ln=jnp.ones((1, KV_LORA_RANK), jnp.float32),
        kv_b=w(ks[3], (KV_LORA_RANK, NUM_HEADS * (QK_NOPE_HEAD_DIM + V_HEAD_DIM))),
        o=w(ks[4], (NUM_HEADS * V_HEAD_DIM, HIDDEN)),
    )


# ---------------- forward pass: one fused pallas_call ----------------
def mla_forward(params, hidden_states, position_ids, *, compute_dtype=jnp.bfloat16):
    B, S, _ = hidden_states.shape
    cd = compute_dtype

    # ---- one-time host-side weight prep (precomputed offline at prod) ----
    perm = _ROPE_PERM
    scale = SOFTMAX_SCALE
    wqb = params["q_b"].reshape(Q_LORA_RANK, NUM_HEADS, Q_HEAD_DIM)
    w_q_nope = wqb[:, :, :QK_NOPE_HEAD_DIM]                       # (Rq, NH, NOPE)
    w_q_rope = wqb[:, :, QK_NOPE_HEAD_DIM:][:, :, perm]           # (Rq, NH, ROPE) perm folded
    wkvb = params["kv_b"].reshape(KV_LORA_RANK, NUM_HEADS, QK_NOPE_HEAD_DIM + V_HEAD_DIM)
    w_k_nope = wkvb[:, :, :QK_NOPE_HEAD_DIM]                      # (Rkv, NH, NOPE)
    w_v = wkvb[:, :, QK_NOPE_HEAD_DIM:]                           # (Rkv, NH, V)
    w_o3 = params["o"].reshape(NUM_HEADS, V_HEAD_DIM, HIDDEN)

    # absorbed-MLA weights; softmax_scale folded into the q side
    w_q_abs = scale * jnp.einsum("rhn,khn->hrk", w_q_nope, w_k_nope)   # (NH, Rq, Rkv)
    w_q_pe = scale * jnp.transpose(w_q_rope, (1, 0, 2))                # (NH, Rq, ROPE)
    w_vo = jnp.einsum("rhv,hvd->hrd", w_v, w_o3)                       # (NH, Rkv, HIDDEN)
    w_kv_c = params["kv_a"][:, :KV_LORA_RANK]                          # (HIDDEN, Rkv)
    w_k_pe = params["kv_a"][:, KV_LORA_RANK:][:, perm]                 # (HIDDEN, ROPE)

    # pre-cast all MXU weights to the compute dtype OUTSIDE the kernel
    w_q_a = params["q_a"].astype(cd)
    w_q_abs, w_q_pe, w_vo = w_q_abs.astype(cd), w_q_pe.astype(cd), w_vo.astype(cd)
    w_kv_c, w_k_pe = w_kv_c.astype(cd), w_k_pe.astype(cd)
    # RMSNorm weights stay f32 (VPU math stays f32)

    # RoPE tables: cos and sign-folded sin packed into ONE (B, S, 2*ROPE) f32 input
    cos_t, sin_t = rotary_cos_sin(S)
    sign = jnp.concatenate([-jnp.ones(QK_ROPE_HEAD_DIM // 2, jnp.float32),
                            jnp.ones(QK_ROPE_HEAD_DIM // 2, jnp.float32)])
    cos_sin = jnp.concatenate([cos_t, sin_t * sign], axis=-1)[position_ids]

    def resident(w):
        # whole-array weight block, resident across the batch grid axis
        zero = (0,) * w.ndim
        return pl.BlockSpec(w.shape, lambda b: zero)

    kernel = functools.partial(
        _mla_fused_kernel,
        compute_dtype=cd,
        approx_recip=(cd == jnp.bfloat16),
        eps=RMS_EPS,
    )

    return pl.pallas_call(
        kernel,
        out_shape=jax.ShapeDtypeStruct((B, S, HIDDEN), hidden_states.dtype),
        grid=(B,),
        in_specs=[
            pl.BlockSpec((None, S, HIDDEN), lambda b: (b, 0, 0)),                  # x
            pl.BlockSpec((None, S, 2 * QK_ROPE_HEAD_DIM), lambda b: (b, 0, 0)),    # cos|sin packed
            resident(w_q_a),
            resident(params["q_a_ln"]),
            resident(w_q_abs),
            resident(w_q_pe),
            resident(w_kv_c),
            resident(w_k_pe),
            resident(params["kv_a_ln"]),
            resident(w_vo),
        ],
        out_specs=pl.BlockSpec((None, S, HIDDEN), lambda b: (b, 0, 0)),
        compiler_params=pltpu.CompilerParams(
            dimension_semantics=("parallel",),       # batch shards across v7x's 2 TCs
            vmem_limit_bytes=32 * 1024 * 1024,
        ),
    )(hidden_states, cos_sin,
      w_q_a, params["q_a_ln"], w_q_abs, w_q_pe,
      w_kv_c, w_k_pe, params["kv_a_ln"], w_vo)


# ---------------- pure-JAX reference (mirrors the PyTorch module) ----------------
def _interleave_to_halves(x):
    return jnp.concatenate([x[..., 0::2], x[..., 1::2]], axis=-1)


def _rotate_half(x):
    d = x.shape[-1] // 2
    return jnp.concatenate([-x[..., d:], x[..., :d]], axis=-1)


def apply_rope(q_pe, k_pe, cos, sin):
    cos = cos[:, None, :, :]
    sin = sin[:, None, :, :]
    qp = _interleave_to_halves(q_pe)
    kp = _interleave_to_halves(k_pe)
    q_emb = qp * cos + _rotate_half(qp) * sin
    k_emb = kp * cos + _rotate_half(kp) * sin
    return q_emb, k_emb


def _ref_rmsnorm(x, w, eps=RMS_EPS):
    xf = x.astype(jnp.float32)
    var = jnp.mean(xf * xf, axis=-1, keepdims=True)
    return w * (xf * jax.lax.rsqrt(var + eps))


def ref_forward(params, hidden_states, position_ids):
    B, S, _ = hidden_states.shape
    xf = hidden_states.reshape(B * S, HIDDEN)
    q_a = _ref_rmsnorm(xf @ params["q_a"], params["q_a_ln"])
    q = (q_a @ params["q_b"]).reshape(B, S, NUM_HEADS, Q_HEAD_DIM).transpose(0, 2, 1, 3)
    q_nope, q_pe = q[..., :QK_NOPE_HEAD_DIM], q[..., QK_NOPE_HEAD_DIM:]
    ckv = xf @ params["kv_a"]
    compressed_kv, k_pe = ckv[:, :KV_LORA_RANK], ckv[:, KV_LORA_RANK:]
    k_pe = k_pe.reshape(B, S, 1, QK_ROPE_HEAD_DIM).transpose(0, 2, 1, 3)
    kv = _ref_rmsnorm(compressed_kv, params["kv_a_ln"]) @ params["kv_b"]
    kv = kv.reshape(B, S, NUM_HEADS, QK_NOPE_HEAD_DIM + V_HEAD_DIM).transpose(0, 2, 1, 3)
    k_nope, v = kv[..., :QK_NOPE_HEAD_DIM], kv[..., QK_NOPE_HEAD_DIM:]
    cos, sin = rotary_cos_sin(S)
    q_pe, k_pe = apply_rope(q_pe, k_pe, cos[position_ids], sin[position_ids])
    query = jnp.concatenate([q_nope, q_pe], axis=-1)
    key = jnp.concatenate(
        [k_nope, jnp.broadcast_to(k_pe, (B, NUM_HEADS, S, QK_ROPE_HEAD_DIM))], axis=-1
    )
    s = jnp.einsum("bhqd,bhkd->bhqk", query, key) * SOFTMAX_SCALE
    p = jax.nn.softmax(s, axis=-1)
    attn = jnp.einsum("bhqk,bhkd->bhqd", p, v)
    attn = attn.transpose(0, 2, 1, 3).reshape(B * S, NUM_HEADS * V_HEAD_DIM)
    return (attn @ params["o"]).reshape(B, S, HIDDEN)


# ---------------- main ----------------
if __name__ == "__main__":
    key = jax.random.PRNGKey(0)
    k_param, k_x = jax.random.split(key)
    params = init_params(k_param)
    x = jax.random.normal(k_x, (BATCH, SEQ, HIDDEN), jnp.float32)
    position_ids = jnp.broadcast_to(jnp.arange(SEQ), (BATCH, SEQ))

    ref = ref_forward(params, x, position_ids)

    # Performance configuration: bf16 weights / MXU operands, f32 accumulation,
    # approx EUP reciprocal.  Checked loosely against the f32 reference.
    run_bf16 = jax.jit(functools.partial(mla_forward, compute_dtype=jnp.bfloat16))
    out = jax.block_until_ready(run_bf16(params, x, position_ids))
    assert out.shape == (BATCH, SEQ, HIDDEN)
    err_bf16 = float(jnp.max(jnp.abs(out - ref)))
    assert jnp.allclose(out, ref, atol=2e-2, rtol=2e-2), f"bf16 max err {err_bf16}"

    # Numerical-validation configuration: same kernel, f32 operands, exact
    # reciprocal -> tight check that the fused/absorbed math matches the module.
    run_f32 = jax.jit(functools.partial(mla_forward, compute_dtype=jnp.float32))
    out_f32 = jax.block_until_ready(run_f32(params, x, position_ids))
    err_f32 = float(jnp.max(jnp.abs(out_f32 - ref)))
    assert jnp.allclose(out_f32, ref, atol=1e-4, rtol=1e-4), f"f32 max err {err_f32}"

    print("KERNEL_OK")
</pallas_src>

<mosaic_0001>
module attributes {stable_mosaic.version = 11 : i64} {
  func.func @_mla_fused_kernel(%arg0: i32, %arg1: memref<1x8x32xf32, #tpu.memory_space<vmem>>, %arg2: memref<1x8x16xf32, #tpu.memory_space<vmem>>, %arg3: memref<32x16xbf16, #tpu.memory_space<vmem>>, %arg4: memref<1x16xf32, #tpu.memory_space<vmem>>, %arg5: memref<2x16x16xbf16, #tpu.memory_space<vmem>>, %arg6: memref<2x16x8xbf16, #tpu.memory_space<vmem>>, %arg7: memref<32x16xbf16, #tpu.memory_space<vmem>>, %arg8: memref<32x8xbf16, #tpu.memory_space<vmem>>, %arg9: memref<1x16xf32, #tpu.memory_space<vmem>>, %arg10: memref<2x16x32xbf16, #tpu.memory_space<vmem>>, %arg11: memref<1x8x32xf32, #tpu.memory_space<vmem>>) attributes {dimension_semantics = [#tpu.dimension_semantics<parallel>], iteration_bounds = array<i64: 2>, scalar_prefetch = 0 : i64, scratch_operands = 0 : i64, tpu.core_type = #tpu.core_type<tc>, window_params = [{transform_indices = @transform_0, window_bounds = array<i64: 1, 8, 32>}, {transform_indices = @transform_1, window_bounds = array<i64: 1, 8, 16>}, {pipeline_mode = #tpu.pipeline_mode<synchronous>, transform_indices = @transform_2, window_bounds = array<i64: 32, 16>}, {pipeline_mode = #tpu.pipeline_mode<synchronous>, transform_indices = @transform_3, window_bounds = array<i64: 1, 16>}, {pipeline_mode = #tpu.pipeline_mode<synchronous>, transform_indices = @transform_4, window_bounds = array<i64: 2, 16, 16>}, {pipeline_mode = #tpu.pipeline_mode<synchronous>, transform_indices = @transform_5, window_bounds = array<i64: 2, 16, 8>}, {pipeline_mode = #tpu.pipeline_mode<synchronous>, transform_indices = @transform_6, window_bounds = array<i64: 32, 16>}, {pipeline_mode = #tpu.pipeline_mode<synchronous>, transform_indices = @transform_7, window_bounds = array<i64: 32, 8>}, {pipeline_mode = #tpu.pipeline_mode<synchronous>, transform_indices = @transform_8, window_bounds = array<i64: 1, 16>}, {pipeline_mode = #tpu.pipeline_mode<synchronous>, transform_indices = @transform_9, window_bounds = array<i64: 2, 16, 32>}, {transform_indices = @transform_10, window_bounds = array<i64: 1, 8, 32>}]} {
    %c0 = arith.constant 0 : index
    %c0_0 = arith.constant 0 : index
    %c0_1 = arith.constant 0 : index
    %0 = vector.load %arg1[%c0, %c0_0, %c0_1] : memref<1x8x32xf32, #tpu.memory_space<vmem>>, vector<1x8x32xf32>
    %1 = vector.shape_cast %0 : vector<1x8x32xf32> to vector<8x32xf32>
    %2 = arith.truncf %1 : vector<8x32xf32> to vector<8x32xbf16>
    %c0_2 = arith.constant 0 : index
    %c0_3 = arith.constant 0 : index
    %c0_4 = arith.constant 0 : index
    %3 = vector.load %arg2[%c0_2, %c0_3, %c0_4] : memref<1x8x16xf32, #tpu.memory_space<vmem>>, vector<1x8x8xf32>
    %4 = vector.shape_cast %3 : vector<1x8x8xf32> to vector<8x8xf32>
    %c0_5 = arith.constant 0 : index
    %c0_6 = arith.constant 0 : index
    %c8 = arith.constant 8 : index
    %5 = vector.load %arg2[%c0_5, %c0_6, %c8] : memref<1x8x16xf32, #tpu.memory_space<vmem>>, vector<1x8x8xf32>
    %6 = vector.shape_cast %5 : vector<1x8x8xf32> to vector<8x8xf32>
    %c0_7 = arith.constant 0 : index
    %c0_8 = arith.constant 0 : index
    %7 = vector.load %arg3[%c0_7, %c0_8] : memref<32x16xbf16, #tpu.memory_space<vmem>>, vector<32x16xbf16>
    %cst = arith.constant dense<0.000000e+00> : vector<8x16xf32>
    %8 = tpu.matmul %2, %7, %cst {dimension_numbers = #tpu.dot_dimension_numbers<[1], [0], [0], [1], [0, 0, 1, 1], [], []>} : vector<8x32xbf16>, vector<32x16xbf16>, vector<8x16xf32> -> vector<8x16xf32>
    %c0_9 = arith.constant 0 : index
    %c0_10 = arith.constant 0 : index
    %9 = vector.load %arg4[%c0_9, %c0_10] : memref<1x16xf32, #tpu.memory_space<vmem>>, vector<1x16xf32>
    %10 = arith.mulf %8, %8 : vector<8x16xf32>
    %cst_11 = arith.constant dense<0.000000e+00> : vector<8xf32>
    %11 = vector.multi_reduction <add>, %10, %cst_11 [1] : vector<8x16xf32> to vector<8xf32>
    %12 = vector.shape_cast %11 : vector<8xf32> to vector<8x1xf32>
    %cst_12 = arith.constant 1.600000e+01 : f32
    %13 = vector.broadcast %cst_12 : f32 to vector<8x1xf32>
    %14 = arith.divf %12, %13 : vector<8x1xf32>
    %cst_13 = arith.constant 9.99999997E-7 : f32
    %15 = vector.broadcast %cst_13 : f32 to vector<8x1xf32>
    %16 = arith.addf %14, %15 : vector<8x1xf32>
    %17 = math.rsqrt %16 : vector<8x1xf32>
    %18 = vector.broadcast %17 : vector<8x1xf32> to vector<8x16xf32>
    %19 = arith.mulf %8, %18 : vector<8x16xf32>
    %20 = vector.broadcast %9 : vector<1x16xf32> to vector<8x16xf32>
    %21 = arith.mulf %20, %19 : vector<8x16xf32>
    %22 = arith.truncf %21 : vector<8x16xf32> to vector<8x16xbf16>
    %23 = vector.shape_cast %22 : vector<8x16xbf16> to vector<1x8x16xbf16>
    %24 = vector.shape_cast %23 : vector<1x8x16xbf16> to vector<1x8x16xbf16>
    %25 = vector.broadcast %24 : vector<1x8x16xbf16> to vector<2x8x16xbf16>
    %c0_14 = arith.constant 0 : index
    %c0_15 = arith.constant 0 : index
    %c0_16 = arith.constant 0 : index
    %26 = vector.load %arg5[%c0_14, %c0_15, %c0_16] : memref<2x16x16xbf16, #tpu.memory_space<vmem>>, vector<2x16x16xbf16>
    "tpu.trace_start"() <{level = 10 : i32, message = "hsr,hrk->hsk"}> : () -> ()
    %cst_17 = arith.constant dense<0.000000e+00> : vector<2x8x16xf32>
    %27 = tpu.matmul %25, %26, %cst_17 {dimension_numbers = #tpu.dot_dimension_numbers<[2], [1], [1], [2], [0, 0, 0, 1, 1, 2], [0], [0]>} : vector<2x8x16xbf16>, vector<2x16x16xbf16>, vector<2x8x16xf32> -> vector<2x8x16xf32>
    "tpu.trace_stop"() : () -> ()
    %c0_18 = arith.constant 0 : index
    %c0_19 = arith.constant 0 : index
    %c0_20 = arith.constant 0 : index
    %28 = vector.load %arg6[%c0_18, %c0_19, %c0_20] : memref<2x16x8xbf16, #tpu.memory_space<vmem>>, vector<2x16x8xbf16>
    "tpu.trace_start"() <{level = 10 : i32, message = "hsr,hrd->hsd"}> : () -> ()
    %cst_21 = arith.constant dense<0.000000e+00> : vector<2x8x8xf32>
    %29 = tpu.matmul %25, %28, %cst_21 {dimension_numbers = #tpu.dot_dimension_numbers<[2], [1], [1], [2], [0, 0, 0, 1, 1, 2], [0], [0]>} : vector<2x8x16xbf16>, vector<2x16x8xbf16>, vector<2x8x8xf32> -> vector<2x8x8xf32>
    "tpu.trace_stop"() : () -> ()
    %30 = vector.extract_strided_slice %29 {offsets = [0, 0, 4], sizes = [2, 8, 4], strides = [1, 1, 1]} : vector<2x8x8xf32> to vector<2x8x4xf32>
    %31 = vector.extract_strided_slice %29 {offsets = [0, 0, 0], sizes = [2, 8, 4], strides = [1, 1, 1]} : vector<2x8x8xf32> to vector<2x8x4xf32>
    %32 = tpu.concatenate %30, %31 in 2 : vector<2x8x4xf32>, vector<2x8x4xf32> -> vector<2x8x8xf32>
    %33 = vector.shape_cast %4 : vector<8x8xf32> to vector<1x8x8xf32>
    %34 = vector.broadcast %33 : vector<1x8x8xf32> to vector<2x8x8xf32>
    %35 = arith.mulf %29, %34 : vector<2x8x8xf32>
    %36 = vector.shape_cast %6 : vector<8x8xf32> to vector<1x8x8xf32>
    %37 = vector.broadcast %36 : vector<1x8x8xf32> to vector<2x8x8xf32>
    %38 = arith.mulf %32, %37 : vector<2x8x8xf32>
    %39 = arith.addf %35, %38 : vector<2x8x8xf32>
    %c0_22 = arith.constant 0 : index
    %c0_23 = arith.constant 0 : index
    %40 = vector.load %arg7[%c0_22, %c0_23] : memref<32x16xbf16, #tpu.memory_space<vmem>>, vector<32x16xbf16>
    %cst_24 = arith.constant dense<0.000000e+00> : vector<8x16xf32>
    %41 = tpu.matmul %2, %40, %cst_24 {dimension_numbers = #tpu.dot_dimension_numbers<[1], [0], [0], [1], [0, 0, 1, 1], [], []>} : vector<8x32xbf16>, vector<32x16xbf16>, vector<8x16xf32> -> vector<8x16xf32>
    %c0_25 = arith.constant 0 : index
    %c0_26 = arith.constant 0 : index
    %42 = vector.load %arg8[%c0_25, %c0_26] : memref<32x8xbf16, #tpu.memory_space<vmem>>, vector<32x8xbf16>
    %cst_27 = arith.constant dense<0.000000e+00> : vector<8x8xf32>
    %43 = tpu.matmul %2, %42, %cst_27 {dimension_numbers = #tpu.dot_dimension_numbers<[1], [0], [0], [1], [0, 0, 1, 1], [], []>} : vector<8x32xbf16>, vector<32x8xbf16>, vector<8x8xf32> -> vector<8x8xf32>
    %c0_28 = arith.constant 0 : index
    %c0_29 = arith.constant 0 : index
    %44 = vector.load %arg9[%c0_28, %c0_29] : memref<1x16xf32, #tpu.memory_space<vmem>>, vector<1x16xf32>
    %45 = arith.mulf %41, %41 : vector<8x16xf32>
    %cst_30 = arith.constant dense<0.000000e+00> : vector<8xf32>
    %46 = vector.multi_reduction <add>, %45, %cst_30 [1] : vector<8x16xf32> to vector<8xf32>
    %47 = vector.shape_cast %46 : vector<8xf32> to vector<8x1xf32>
    %cst_31 = arith.constant 1.600000e+01 : f32
    %48 = vector.broadcast %cst_31 : f32 to vector<8x1xf32>
    %49 = arith.divf %47, %48 : vector<8x1xf32>
    %cst_32 = arith.constant 9.99999997E-7 : f32
    %50 = vector.broadcast %cst_32 : f32 to vector<8x1xf32>
    %51 = arith.addf %49, %50 : vector<8x1xf32>
    %52 = math.rsqrt %51 : vector<8x1xf32>
    %53 = vector.broadcast %52 : vector<8x1xf32> to vector<8x16xf32>
    %54 = arith.mulf %41, %53 : vector<8x16xf32>
    %55 = vector.broadcast %44 : vector<1x16xf32> to vector<8x16xf32>
    %56 = arith.mulf %55, %54 : vector<8x16xf32>
    %57 = vector.extract_strided_slice %43 {offsets = [0, 4], sizes = [8, 4], strides = [1, 1]} : vector<8x8xf32> to vector<8x4xf32>
    %58 = vector.extract_strided_slice %43 {offsets = [0, 0], sizes = [8, 4], strides = [1, 1]} : vector<8x8xf32> to vector<8x4xf32>
    %59 = tpu.concatenate %57, %58 in 1 : vector<8x4xf32>, vector<8x4xf32> -> vector<8x8xf32>
    %60 = arith.mulf %43, %4 : vector<8x8xf32>
    %61 = arith.mulf %59, %6 : vector<8x8xf32>
    %62 = arith.addf %60, %61 : vector<8x8xf32>
    %63 = tpu.concatenate %27, %39 in 2 : vector<2x8x16xf32>, vector<2x8x8xf32> -> vector<2x8x24xf32>
    %64 = arith.truncf %63 : vector<2x8x24xf32> to vector<2x8x24xbf16>
    %65 = tpu.concatenate %56, %62 in 1 : vector<8x16xf32>, vector<8x8xf32> -> vector<8x24xf32>
    %66 = arith.truncf %65 : vector<8x24xf32> to vector<8x24xbf16>
    %67 = vector.shape_cast %66 : vector<8x24xbf16> to vector<1x8x24xbf16>
    %68 = vector.shape_cast %67 : vector<1x8x24xbf16> to vector<1x8x24xbf16>
    %69 = vector.broadcast %68 : vector<1x8x24xbf16> to vector<2x8x24xbf16>
    "tpu.trace_start"() <{level = 10 : i32, message = "hqd,hkd->hqk"}> : () -> ()
    %cst_33 = arith.constant dense<0.000000e+00> : vector<2x8x8xf32>
    %70 = tpu.matmul %64, %69, %cst_33 {dimension_numbers = #tpu.dot_dimension_numbers<[2], [2], [1], [1], [0, 0, 0, 1, 1, 1], [0], [0]>} : vector<2x8x24xbf16>, vector<2x8x24xbf16>, vector<2x8x8xf32> -> vector<2x8x8xf32>
    "tpu.trace_stop"() : () -> ()
    %cst_34 = arith.constant dense<0xFF800000> : vector<2x8xf32>
    %71 = vector.multi_reduction <maximumf>, %70, %cst_34 [2] : vector<2x8x8xf32> to vector<2x8xf32>
    %72 = vector.shape_cast %71 : vector<2x8xf32> to vector<2x8x1xf32>
    %73 = vector.broadcast %72 : vector<2x8x1xf32> to vector<2x8x8xf32>
    %74 = arith.subf %70, %73 : vector<2x8x8xf32>
    %75 = math.exp %74 : vector<2x8x8xf32>
    %cst_35 = arith.constant dense<0.000000e+00> : vector<2x8xf32>
    %76 = vector.multi_reduction <add>, %75, %cst_35 [2] : vector<2x8x8xf32> to vector<2x8xf32>
    %77 = vector.shape_cast %76 : vector<2x8xf32> to vector<2x8x1xf32>
    %78 = arith.truncf %56 : vector<8x16xf32> to vector<8x16xbf16>
    %79 = vector.shape_cast %78 : vector<8x16xbf16> to vector<1x8x16xbf16>
    %80 = vector.shape_cast %79 : vector<1x8x16xbf16> to vector<1x8x16xbf16>
    %81 = vector.broadcast %80 : vector<1x8x16xbf16> to vector<2x8x16xbf16>
    %82 = arith.truncf %75 : vector<2x8x8xf32> to vector<2x8x8xbf16>
    "tpu.trace_start"() <{level = 10 : i32, message = "hqk,hkr->hqr"}> : () -> ()
    %cst_36 = arith.constant dense<0.000000e+00> : vector<2x8x16xf32>
    %83 = tpu.matmul %82, %81, %cst_36 {dimension_numbers = #tpu.dot_dimension_numbers<[2], [1], [1], [2], [0, 0, 0, 1, 1, 2], [0], [0]>} : vector<2x8x8xbf16>, vector<2x8x16xbf16>, vector<2x8x16xf32> -> vector<2x8x16xf32>
    "tpu.trace_stop"() : () -> ()
    %84 = tpu.reciprocal %77 {approx = true} : vector<2x8x1xf32> -> vector<2x8x1xf32>
    %85 = vector.broadcast %84 : vector<2x8x1xf32> to vector<2x8x16xf32>
    %86 = arith.mulf %83, %85 : vector<2x8x16xf32>
    %87 = arith.truncf %86 : vector<2x8x16xf32> to vector<2x8x16xbf16>
    %c0_37 = arith.constant 0 : index
    %c0_38 = arith.constant 0 : index
    %c0_39 = arith.constant 0 : index
    %88 = vector.load %arg10[%c0_37, %c0_38, %c0_39] : memref<2x16x32xbf16, #tpu.memory_space<vmem>>, vector<2x16x32xbf16>
    "tpu.trace_start"() <{level = 10 : i32, message = "hqr,hrd->hqd"}> : () -> ()
    %cst_40 = arith.constant dense<0.000000e+00> : vector<2x8x32xf32>
    %89 = tpu.matmul %87, %88, %cst_40 {dimension_numbers = #tpu.dot_dimension_numbers<[2], [1], [1], [2], [0, 0, 0, 1, 1, 2], [0], [0]>} : vector<2x8x16xbf16>, vector<2x16x32xbf16>, vector<2x8x32xf32> -> vector<2x8x32xf32>
    "tpu.trace_stop"() : () -> ()
    %cst_41 = arith.constant dense<0.000000e+00> : vector<8x32xf32>
    %90 = vector.multi_reduction <add>, %89, %cst_41 [0] : vector<2x8x32xf32> to vector<8x32xf32>
    %c0_42 = arith.constant 0 : index
    %c0_43 = arith.constant 0 : index
    %c0_44 = arith.constant 0 : index
    %91 = vector.load %arg11[%c0_42, %c0_43, %c0_44] : memref<1x8x32xf32, #tpu.memory_space<vmem>>, vector<1x8x32xf32>
    %92 = vector.shape_cast %91 : vector<1x8x32xf32> to vector<8x32xf32>
    %93 = vector.shape_cast %90 : vector<8x32xf32> to vector<1x8x32xf32>
    tpu.vector_store %arg11[%c0_42, %c0_43, %c0_44], %93 {strides = array<i32>} : memref<1x8x32xf32, #tpu.memory_space<vmem>>, vector<1x8x32xf32>,
    return
  }
  func.func @transform_0(%arg0: i32) -> (i32, i32, i32) {
    %c0_i32 = arith.constant 0 : i32
    %c0_i32_0 = arith.constant 0 : i32
    %c0_i32_1 = arith.constant 0 : i32
    return %arg0, %c0_i32, %c0_i32_0 : i32, i32, i32
  }
  func.func @transform_1(%arg0: i32) -> (i32, i32, i32) {
    %c0_i32 = arith.constant 0 : i32
    %c0_i32_0 = arith.constant 0 : i32
    %c0_i32_1 = arith.constant 0 : i32
    return %arg0, %c0_i32, %c0_i32_0 : i32, i32, i32
  }
  func.func @transform_2(%arg0: i32) -> (i32, i32) {
    %c0_i32 = arith.constant 0 : i32
    %c0_i32_0 = arith.constant 0 : i32
    %c0_i32_1 = arith.constant 0 : i32
    return %c0_i32, %c0_i32_0 : i32, i32
  }
  func.func @transform_3(%arg0: i32) -> (i32, i32) {
    %c0_i32 = arith.constant 0 : i32
    %c0_i32_0 = arith.constant 0 : i32
    %c0_i32_1 = arith.constant 0 : i32
    return %c0_i32, %c0_i32_0 : i32, i32
  }
  func.func @transform_4(%arg0: i32) -> (i32, i32, i32) {
    %c0_i32 = arith.constant 0 : i32
    %c0_i32_0 = arith.constant 0 : i32
    %c0_i32_1 = arith.constant 0 : i32
    %c0_i32_2 = arith.constant 0 : i32
    return %c0_i32, %c0_i32_0, %c0_i32_1 : i32, i32, i32
  }
  func.func @transform_5(%arg0: i32) -> (i32, i32, i32) {
    %c0_i32 = arith.constant 0 : i32
    %c0_i32_0 = arith.constant 0 : i32
    %c0_i32_1 = arith.constant 0 : i32
    %c0_i32_2 = arith.constant 0 : i32
    return %c0_i32, %c0_i32_0, %c0_i32_1 : i32, i32, i32
  }
  func.func @transform_6(%arg0: i32) -> (i32, i32) {
    %c0_i32 = arith.constant 0 : i32
    %c0_i32_0 = arith.constant 0 : i32
    %c0_i32_1 = arith.constant 0 : i32
    return %c0_i32, %c0_i32_0 : i32, i32
  }
  func.func @transform_7(%arg0: i32) -> (i32, i32) {
    %c0_i32 = arith.constant 0 : i32
    %c0_i32_0 = arith.constant 0 : i32
    %c0_i32_1 = arith.constant 0 : i32
    return %c0_i32, %c0_i32_0 : i32, i32
  }
  func.func @transform_8(%arg0: i32) -> (i32, i32) {
    %c0_i32 = arith.constant 0 : i32
    %c0_i32_0 = arith.constant 0 : i32
    %c0_i32_1 = arith.constant 0 : i32
    return %c0_i32, %c0_i32_0 : i32, i32
  }
  func.func @transform_9(%arg0: i32) -> (i32, i32, i32) {
    %c0_i32 = arith.constant 0 : i32
    %c0_i32_0 = arith.constant 0 : i32
    %c0_i32_1 = arith.constant 0 : i32
    %c0_i32_2 = arith.constant 0 : i32
    return %c0_i32, %c0_i32_0, %c0_i32_1 : i32, i32, i32
  }
  func.func @transform_10(%arg0: i32) -> (i32, i32, i32) {
    %c0_i32 = arith.constant 0 : i32
    %c0_i32_0 = arith.constant 0 : i32
    %c0_i32_1 = arith.constant 0 : i32
    return %arg0, %c0_i32, %c0_i32_0 : i32, i32, i32
  }
}

</mosaic_0001>

<bundles_post_ra>
// kernel: mla_forward.1
= control target key start
LH: loop header
LB: loop body
LE: loop exit
PB: predicated region body
PF: predicated region fallthrough
CT: control target
= control target key end

     0   :  { %15 = vsyncpa [#allocation3], 0  ;;  %s1809_s0 = inlined_call_operand.vmem [shape: f32[2,8,32], index: 0, kind: input, shape index: {}]   ;;  %s1810_s1 = inlined_call_operand.vmem [shape: f32[2,8,16], index: 1, kind: input, shape index: {}]   ;;  %s1811_s2 = inlined_call_operand.vmem [shape: bf16[32,16], index: 2, kind: input, shape index: {}]   ;;  %s1812_s3 = inlined_call_operand.vmem [shape: f32[1,16], index: 3, kind: input, shape index: {}]   ;;  %s1813_s4 = inlined_call_operand.vmem [shape: bf16[2,16,16], index: 4, kind: input, shape index: {}]   ;;  %s1814_s5 = inlined_call_operand.vmem [shape: bf16[2,16,8], index: 5, kind: input, shape index: {}]   ;;  %s1815_s6 = inlined_call_operand.vmem [shape: bf16[32,16], index: 6, kind: input, shape index: {}]   ;;  %s1816_s7 = inlined_call_operand.vmem [shape: bf16[32,8], index: 7, kind: input, shape index: {}]   ;;  %s1817_s8 = inlined_call_operand.vmem [shape: f32[1,16], index: 8, kind: input, shape index: {}]   ;;  %s1818_s9 = inlined_call_operand.vmem [shape: bf16[2,16,32], index: 9, kind: input, shape index: {}]   ;;  %s1819_s10 = inlined_call_operand.hbm [shape: f32[2,8,32], index: 10, kind: output, shape index: {}]  }
   0x1   :  { %17 = vsyncpa [#allocation3 + $0x1], 0  ;;  %s1584_s13 = smov 0   ;;  %s1586_s14 = smov 0  }
   0x2   :  { %s1588_s15 = smov 0   ;;  %s1590_s16 = smov 0  }
   0x3 LB: > { %s1605_s17 = sadd.s32 4294967295, %s1520_s16   ;;  %s1233_s18 = sadd.s32 4294967294, %s1520_s16   ;;  %s1520_s16 = sphi %s1590_s16, %s1825_s16   ;;  %s1516_s15 = sphi %s1588_s15, %s1824_s15   ;;  %s1512_s14 = sphi %s1586_s14, %s1823_s14   ;;  %s1508_s13 = sphi %s1584_s13, %s1822_s13  }
   0x4   : > { %s1609_s19 = sadd.s32 1, %s1520_s16   ;;  %s250_s20 = sadd.s32 1, %s1516_s15 }
   0x5   : > { %s247_s21 = ssub.s32 %s1520_s16, %s1609_s19  ;;  %p260_p0 = scmp.ne.s32.totalorder %s1516_s15, %s1512_s14 }
   0x6   : > { %p248_p1 = scmp.eq.s32.totalorder %s247_s21, 0  ;;  %p261_p2 = scmp.eq.s32.totalorder %s1605_s17, 1 }
   0x7   : > { %p266_p3 = scmp.ne.s32.totalorder %s1512_s14, %s1508_s13  ;;  %p267_p4 = scmp.eq.s32.totalorder %s1233_s18, 1 }
   0x8   : > { %s1620_s22 = scalar_select %p248_p1, %s1516_s15, %s250_s20  }
   0x9   : > { %p1622_p5 = por %p261_p2, %p260_p0  ;;  %p1626_p6 = por %p267_p4, %p266_p3 }
   0xa   : > { %p1236_p7 = scmp.ge.s32.totalorder %s1520_s16, 1  ;;  %p323_p8 = scmp.lt.s32.totalorder %s1520_s16, 3 }
   0xc   : > { %p324_p9 = pnand %p1236_p7, %p323_p8 }
   0xd   : > { %v1434_v0 = vld [vmem:[%s1811_s2] sm:$0xff] (!%p324_p9)   ;;  %v1522_v1 = vmov (!%p324_p9), 0.0   ;;  %v1435_v2 = vld [vmem:[%s1811_s2 + $0x8] sm:$0xff] (!%p324_p9)   ;;  %vm1523_vm0 = vmmov (!%p324_p9), 0   ;;  %p364_p10 = scmp.lt.s32.totalorder (!%p324_p9), %s1605_s17, 1  ;;  %vm392_vm1 = vcmask (!%p324_p9), 261120  }
   0xe   : > { %327 = sbr.rel (%p324_p9) target bundleno = 1710 (0x6ae), region = 60  ;;  %1300 = vmatprep.subr.bf16.mxu0 (!%p324_p9), %v1522_v1  ;;  %1308 = vmatprep.subr.bf16.mxu1 (!%p324_p9), %v1522_v1  ;;  %vm438_vm2 = vcmask (!%p324_p9), 130048   ;;  %v1436_v11 = vld [vmem:[%s1813_s4] sm:$0xff] (!%p324_p9)   ;;  %s1524_s11 = smov (!%p324_p9), 120   ;;  %v1438_v21 = vld [vmem:[%s1813_s4 + $0x8] sm:$0xff] (!%p324_p9)   ;;  %vm664_vm3 = vcmask (!%p324_p9), 31744  }
   0xf   : > { %1301 = vmatpush3.bf16.msra.mxu0 (!%p324_p9), %v1434_v0  ;;  %1304 = vmatprep.mubr.msk.bf16.mxu0 (!%p324_p9), %vm1523_vm0, %v1522_v1  ;;  %v1437_v12 = vld [vmem:[%s1814_s5] sm:$0xff] (!%p324_p9)   ;;  %v1443_v24 = vld [vmem:[%s1815_s6 + $0x8] sm:$0xff] (!%p324_p9)   ;;  %s1525_s21 = smov (!%p324_p9), 124   ;;  %s1527_s25 = smov (!%p324_p9), 16   ;;  %vm834_vm4 = vcmask (!%p324_p9), 195584   ;;  %vm949_vm5 = vcmask (!%p324_p9), 1043456  }
  0x10   : > { %1302 = vmatprep.subr.bf16.mxu0 (!%p324_p9), %v1522_v1  ;;  %1310 = vmatprep.mubr.msk.bf16.mxu1 (!%p324_p9), %vm1523_vm0, %v1522_v1  ;;  %v1243_v18 = vld [vmem:[%s1812_s3] ss:$0 sm:$0xff] (!%p324_p9)  ;;  %v1439_v25 = vld [vmem:[%s1814_s5 + $0x8] sm:$0xff] (!%p324_p9)   ;;  %vm924_vm6 = vcmask (!%p324_p9), 64512  }
  0x11   : > { %1309 = vmatpush3.bf16.msra.mxu1 (!%p324_p9), %v1436_v11  ;;  %v1442_v23 = vld [vmem:[%s1815_s6] sm:$0xff] (!%p324_p9)   ;;  %v1441_v27 = vld [vmem:[%s1816_s7 + $0x8] sm:$0xff] (!%p324_p9)  }
  0x12   : > { %1314 = vmatprep.subr.bf16.mxu1 (!%p324_p9), %v1522_v1  ;;  %v1440_v26 = vld [vmem:[%s1816_s7] sm:$0xff] (!%p324_p9)  }
  0x13   : > { %1303 = vmatpush3.bf16.msra.mxu0 (!%p324_p9), %v1435_v2 }
  0x14   : > { %1320 = vmatprep.subr.bf16.mxu0 (!%p324_p9), %v1522_v1 }
  0x15   : > { %s365_s29 = scalar_select %p364_p10, %s1605_s17, 1 }
  0x17   : > { %s1238_s30 = sshll.u32 %s365_s29, 3 }
  0x18   : > { %s367_s18 = scalar_lea.vmem %s1809_s0, %s1238_s30  ;;  %s371_s29 = scalar_lea.vmem %s1810_s1, %s1238_s30 }
  0x19   : > { %v373_v3 = vld [vmem:[%s367_s18] sm:$0xff]  ;;  %s1526_s30 = smov 4   ;;  %s361_s18 = sand.u32 1, %s1512_s14  }
  0x1a   : > { %v374_v4 = vpack.c.bf16 %v373_v3, %v373_v3  ;;  %v1666_v13 = vld [vmem:[%s371_s29] sm:$0xff]  ;;  %s1237_s20 = sshll.u32 %s361_s18, 3 }
  0x1b   : > { %670 = vrot.lane.b32.xlu1 %v1666_v13, %s1524_s11  ;;  %s1528_s11 = smov [#allocation2]  }
  0x1c   : > { %1305 = vmatmul.mubr.msk.bf16.vlgmr.msra.gmra.mrb[0].mxu0 %vm392_vm1, %v374_v4  ;;  %s1462_s12 = sshll.u32 %s1528_s11, 4  ;;  %s1463_s12 = int_to_ptr.vmem [resolvable:$false] %s1462_s12 }
  0x1d   : > { %1322 = vmatprep.mubr.msk.bf16.mxu0 %vm1523_vm0, %v1522_v1  ;;  %1321 = vmatpush3.bf16.msra.mxu0 %v1437_v12 }
  0x1e   : > { %1332 = vmatprep.subr.bf16.mxu0 %v1522_v1 }
  0x8d   : > { %v671_v54 = vpop.permute.xlu1 %670 }
  0xef   : > { %v430_v5 = vpop.f32.mrb[0].mxu0 }
  0xf0   : > { %v1306_v6 = vpop.f32.mrb[1].mxu0  ;;  %v437_v7 = vmul.f32 %v430_v5, %v430_v5 }
  0xf1   : > { %v433_v8 = vpop.f32.mrb[2].mxu0 }
  0xf2   : > { %v1307_v9 = vpop.f32.mrb[3].mxu0  ;;  %v439_v10 = vsel %vm438_vm2, %v437_v7, 0.0 }
  0xf3   : > { %440 = vadd.xlane.f32.xlu0 %v439_v10 }
 0x180   : > { %v441_v14 = vpop.xlane.xlu0 %440 }
 0x181   : > { %v443_v15 = vmul.f32 0.0625, %v441_v14 }
 0x183   : > { %v444_v16 = vadd.f32 1e-06, %v443_v15 }
 0x185   : > { %1446 = vrsqrt.f32 %v444_v16 }
 0x18f   : > { %v1447_v17 = vpop.eup %1446 }
 0x190   : > { %v446_v19 = vmul.f32 %v1447_v17, %v430_v5  ;;  %v1258_v17 = vld [vmem:[%s1817_s8] ss:$0 sm:$0xff] }
 0x192   : > { %v453_v20 = vmul.f32 %v1243_v18, %v446_v19 }
 0x194   : > { %v454_v22 = vpack.c.bf16 %v453_v20, %v453_v20 }
 0x196   : > { %1311 = vmatmul.mubr.msk.bf16.vlgmr.msra.gmra.mrb[0].mxu1 %vm438_vm2, %v454_v22  ;;  %1323 = vmatmul.mubr.msk.bf16.vlgmr.msra.gmra.mrb[4].mxu0 %vm438_vm2, %v454_v22 }
 0x197   : > { %1315 = vmatpush3.bf16.msra.mxu1 %v1438_v21  ;;  %1316 = vmatprep.mubr.msk.bf16.mxu1 %vm1523_vm0, %v1522_v1 }
 0x198   : > { %1326 = vmatprep.subr.bf16.mxu1 %v1522_v1  ;;  %1333 = vmatpush3.bf16.msra.mxu0 %v1442_v23 }
 0x199   : > { %1334 = vmatprep.subr.bf16.mxu0 %v1522_v1  ;;  %1336 = vmatprep.mubr.msk.bf16.mxu0 %vm1523_vm0, %v1522_v1 }
 0x19c   : > { %1335 = vmatpush3.bf16.msra.mxu0 %v1443_v24 }
 0x19d   : > { %1348 = vmatprep.subr.bf16.mxu0 %v1522_v1 }
 0x19e   : > { %1317 = vmatmul.mubr.msk.bf16.vlgmr.msra.gmra.mrb[4].mxu1 %vm438_vm2, %v454_v22 }
 0x19f   : > { %1327 = vmatpush3.bf16.msra.mxu1 %v1439_v25  ;;  %1328 = vmatprep.mubr.msk.bf16.mxu1 %vm1523_vm0, %v1522_v1 }
 0x1a0   : > { %1340 = vmatprep.subr.bf16.mxu1 %v1522_v1  ;;  %1337 = vmatmul.mubr.msk.bf16.vlgmr.msra.gmra.mrb[8].mxu0 %vm392_vm1, %v374_v4 }
 0x1a1   : > { %1350 = vmatprep.mubr.msk.bf16.mxu0 %vm1523_vm0, %v1522_v1 }
 0x1a6   : > { %1329 = vmatmul.mubr.msk.bf16.vlgmr.msra.gmra.mrb[8].mxu1 %vm438_vm2, %v454_v22 }
 0x1a7   : > { %1341 = vmatpush3.bf16.msra.mxu1 %v1440_v26  ;;  %1344 = vmatprep.mubr.msk.bf16.mxu1 %vm1523_vm0, %v1522_v1 }
 0x1a8   : > { %1342 = vmatprep.subr.bf16.mxu1 %v1522_v1 }
 0x1ab   : > { %1343 = vmatpush3.bf16.msra.mxu1 %v1441_v27 }
 0x1ac   : > { %1354 = vmatprep.subr.bf16.mxu1 %v1522_v1 }
 0x1ae   : > { %1345 = vmatmul.mubr.msk.bf16.vlgmr.msra.gmra.mrb[12].mxu1 %vm392_vm1, %v374_v4 }
 0x1af   : > { %1356 = vmatprep.mubr.msk.bf16.mxu1 %vm1523_vm0, %v1522_v1 }
 0x269   : > { %v1714_v28 = vpop.f32.mrb[0].mxu1  ;;  %v598_v29 = vpop.f32.mrb[4].mxu0 }
 0x26a   : > { %v1312_v30 = vpop.f32.mrb[1].mxu1  ;;  %652 = vrot.lane.b32.xlu1 %v598_v29, %s1525_s21  ;;  %v1324_v31 = vpop.f32.mrb[5].mxu0  ;;  %v667_v5 = vmul.f32 %v598_v29, %v1666_v13 }
 0x26b   : > { %v505_v32 = vpop.f32.mrb[2].mxu1  ;;  %v601_v33 = vpop.f32.mrb[6].mxu0 }
 0x26c   : > { %v1313_v34 = vpop.f32.mrb[3].mxu1  ;;  %v1325_v35 = vpop.f32.mrb[7].mxu0 }
 0x271   : > { %v1716_v36 = vpop.f32.mrb[4].mxu1 }
 0x272   : > { %v1318_v37 = vpop.f32.mrb[5].mxu1 }
 0x273   : > { %v551_v38 = vpop.f32.mrb[6].mxu1  ;;  %v727_v39 = vpop.f32.mrb[8].mxu0 }
 0x274   : > { %v1319_v40 = vpop.f32.mrb[7].mxu1  ;;  %v1338_v41 = vpop.f32.mrb[9].mxu0  ;;  %v790_v52 = vmul.f32 %v727_v39, %v727_v39 }
 0x275   : > { %v730_v42 = vpop.f32.mrb[10].mxu0 }
 0x276   : > { %v1339_v43 = vpop.f32.mrb[11].mxu0  ;;  %v791_v53 = vsel %vm438_vm2, %v790_v52, 0.0 }
 0x279   : > { %v644_v44 = vpop.f32.mrb[8].mxu1 }
 0x27a   : > { %v1330_v45 = vpop.f32.mrb[9].mxu1  ;;  %654 = vrot.lane.b32.xlu1 %v644_v44, %s1525_s21  ;;  %v668_v6 = vmul.f32 %v644_v44, %v1666_v13 }
 0x27b   : > { %v647_v46 = vpop.f32.mrb[10].mxu1 }
 0x27c   : > { %v1331_v47 = vpop.f32.mrb[11].mxu1 }
 0x281   : > { %v783_v48 = vpop.f32.mrb[12].mxu1 }
 0x282   : > { %806 = vrot.lane.b32.xlu0 %v783_v48, %s1525_s21  ;;  %v1346_v49 = vpop.f32.mrb[13].mxu1  ;;  %809 = vrot.lane.b32.xlu1 %v783_v48, %s1526_s30  ;;  %v813_v60 = vmul.f32 %v783_v48, %v1666_v13  ;;  %s1268_s21 = sshll.u32 %s1605_s17, 7  ;;  %s1149_s17 = scalar_lea.sflag [#allocation3], %s361_s18 }
 0x283   : > { %v786_v50 = vpop.f32.mrb[14].mxu1  ;;  %s1766_s28 = scalar_lea.hbm %s1819_s10, %s1268_s21 }
 0x284   : > { %v1347_v51 = vpop.f32.mrb[15].mxu1 }
 0x286   : > { %658 = vrot.lane.b32.xlu1 %v598_v29, %s1526_s30 }
 0x28a   : > { %660 = vrot.lane.b32.xlu1 %v644_v44, %s1526_s30  ;;  %s363_s30 = scalar_lea.vmem [#allocation2], %s1237_s20  ;;  %s1464_s20 = scalar_lea.vmem %s1463_s12, 256 }
 0x2ae   : > { %792 = vadd.xlane.f32.xlu1 %v791_v53  ;;  %v1444_v53 = vld [vmem:[%s1818_s9] sm:$0xff]  }
 0x2dc   : > { %v653_v55 = vpop.permute.xlu1 %652 }
 0x2ec   : > { %v655_v56 = vpop.permute.xlu1 %654 }
 0x2f4   : > { %v807_v57 = vpop.permute.xlu0 %806  ;;  %v810_v58 = vpop.permute.xlu1 %809 }
 0x2f5   : > { %v812_v59 = vsel %vm664_vm3, %v807_v57, %v810_v58 }
 0x2f6   : > { %v814_v61 = vmul.f32 %v812_v59, %v671_v54 }
 0x2f8   : > { %v659_v62 = vpop.permute.xlu1 %658  ;;  %v815_v63 = vadd.f32 %v814_v61, %v813_v60 }
 0x2f9   : > { %v665_v0 = vsel %vm664_vm3, %v653_v55, %v659_v62 }
 0x2fa   : > { %829 = vrot.lane.b32.xlu0 %v815_v63, %s1527_s25  ;;  %v673_v2 = vmul.f32 %v671_v54, %v665_v0 }
 0x2fc   : > { %v661_v3 = vpop.permute.xlu1 %660  ;;  %v675_v8 = vadd.f32 %v673_v2, %v667_v5 }
 0x2fd   : > { %v666_v4 = vsel %vm664_vm3, %v655_v56, %v661_v3 }
 0x2fe   : > { %v674_v7 = vmul.f32 %v671_v54, %v666_v4  ;;  %v1445_v54 = vld [vmem:[%s1818_s9 + $0x8] sm:$0xff]  }
 0x300   : > { %v676_v9 = vadd.f32 %v674_v7, %v668_v6 }
 0x302   : > { %v1429_v10 = vpack.i.bf16 %v676_v9, %v675_v8 }
 0x304   : > { %1430 = vrot.lane.b32.xlu0 %v1429_v10, %s1527_s25  ;;  %s1162_s25 = sshll.u32 %s363_s30, 4  ;;  %s1768_s25 = int_to_ptr.vmem [resolvable:$true] %s1162_s25 }
 0x305   : > { %s1458_s29 = scalar_lea.vmem %s1768_s25, 128  ;;  %p1465_p0 = scmp.lt.s32.totalorder %s1768_s25, %s1463_s12 }
 0x306   : > { %p1459_p11 = scmp.ne.s32.totalorder %s1768_s25, %s1458_s29  ;;  %p1466_p1 = scmp.lt.s32.totalorder %s1464_s20, %s1458_s29 }
 0x308   : > { %p1460_p12 = pnand %p1459_p11, %p1622_p5  ;;  %p1467_p2 = por %p1466_p1, %p1465_p0 }
 0x30a   : > { %p1461_p13 = pneg %p1460_p12 }
 0x30c   : > { %p1468_p3 = pnand %p1467_p2, %p1461_p13 }
 0x33b   : > { %v793_v11 = vpop.xlane.xlu1 %792 }
 0x33c   : > { %v794_v12 = vmul.f32 0.0625, %v793_v11 }
 0x33e   : > { %v795_v14 = vadd.f32 1e-06, %v794_v12 }
 0x340   : > { %1448 = vrsqrt.f32 %v795_v14 }
 0x34a   : > { %v1449_v15 = vpop.eup %1448 }
 0x34b   : > { %v797_v16 = vmul.f32 %v1449_v15, %v727_v39 }
 0x34d   : > { %v804_v18 = vmul.f32 %v1258_v17, %v797_v16 }
 0x34f   : > { %v943_v25 = vpack.c.bf16 %v804_v18, %v804_v18 }
 0x351   : > { %v951_v31 = vsel %vm949_vm5, %v943_v25, 0 }
 0x36c   : > { %v830_v19 = vpop.permute.xlu0 %829 }
 0x36d   : > { %v832_v20 = vsel %vm438_vm2, %v804_v18, %v830_v19 }
 0x36e   : > { %v833_v13 = vpack.c.bf16 %v832_v20, %v832_v20 }
 0x370   : > { %v839_v21 = vsel %vm834_vm4, %v833_v13, 0 }
 0x371   : > { %1349 = vmatpush3.bf16.xpose.msra.mxu0 %v839_v21  ;;  %1355 = vmatpush3.bf16.xpose.msra.mxu1 %v839_v21 }
 0x372   : > { %1360 = vmatprep.subr.bf16.mxu0 %v1522_v1  ;;  %1366 = vmatprep.subr.bf16.mxu1 %v1522_v1 }
 0x376   : > { %v1431_v22 = vpop.permute.xlu0 %1430 }
 0x377   : > { %v1433_v23 = vunpack.i.h.bf16 %v1431_v22  ;;  %v1432_v24 = vunpack.i.l.bf16 %v1431_v22 }
 0x379   : > { %v825_v26 = vsel %vm438_vm2, %v1716_v36, %v1433_v23  ;;  %v824_v27 = vsel %vm438_vm2, %v1714_v28, %v1432_v24 }
 0x37a   : > { %v827_v29 = vpack.c.bf16 %v825_v26, %v825_v26  ;;  %v826_v30 = vpack.c.bf16 %v824_v27, %v824_v27 }
 0x37c   : > { %1351 = vmatmul.mubr.msk.bf16.vlgmr.msra.gmra.mrb[12].mxu0 %vm834_vm4, %v826_v30  ;;  %1357 = vmatmul.mubr.msk.bf16.vlgmr.msra.gmra.mrb[16].mxu1 %vm834_vm4, %v827_v29 }
 0x37d   : > { %1361 = vmatpush3.bf16.msra.mxu0 %v951_v31  ;;  %1367 = vmatpush3.bf16.msra.mxu1 %v951_v31 }
 0x37e   : > { %1362 = vmatprep.mubr.msk.bf16.mxu0 %vm1523_vm0, %v1522_v1  ;;  %1368 = vmatprep.mubr.msk.bf16.mxu1 %vm1523_vm0, %v1522_v1 }
 0x37f   : > { %1372 = vmatprep.subr.bf16.mxu0 %v1522_v1  ;;  %1378 = vmatprep.subr.bf16.mxu1 %v1522_v1 }
 0x44f   : > { %v875_v28 = vpop.f32.mrb[12].mxu0  ;;  %v918_v32 = vpop.f32.mrb[16].mxu1 }
 0x450   : > { %v1352_v33 = vpop.f32.mrb[13].mxu0  ;;  %v1358_v34 = vpop.f32.mrb[17].mxu1  ;;  %v928_v35 = vsel %vm924_vm6, %v918_v32, -inf  ;;  %v925_v36 = vsel %vm924_vm6, %v875_v28, -inf }
 0x451   : > { %929 = vmax.xlane.f32.xlu1 %v928_v35  ;;  %v921_v37 = vpop.f32.mrb[18].mxu1  ;;  %926 = vmax.xlane.f32.xlu0 %v925_v36  ;;  %v878_v38 = vpop.f32.mrb[14].mxu0 }
 0x452   : > { %v1353_v39 = vpop.f32.mrb[15].mxu0  ;;  %v1359_v40 = vpop.f32.mrb[19].mxu1 }
 0x4de   : > { %v930_v41 = vpop.xlane.xlu1 %929  ;;  %v927_v42 = vpop.xlane.xlu0 %926 }
 0x4df   : > { %v932_v43 = vsub.f32 %v918_v32, %v930_v41  ;;  %v931_v44 = vsub.f32 %v875_v28, %v927_v42 }
 0x4e1   : > { %v935_v45 = vmul.f32 1.442695, %v932_v43  ;;  %v933_v46 = vmul.f32 1.442695, %v931_v44 }
 0x4e3   : > { %1450 = vpow2.f32 %v935_v45 }
 0x4e4   : > { %1452 = vpow2.f32 %v933_v46 }
 0x4ed   : > { %v1451_v47 = vpop.eup %1450 }
 0x4ee   : > { %v1453_v48 = vpop.eup %1452  ;;  %v940_v49 = vsel %vm924_vm6, %v1451_v47, 0.0  ;;  %v945_v50 = vpack.c.bf16 %v1451_v47, %v1451_v47 }
 0x4ef   : > { %941 = vadd.xlane.f32.xlu0 %v940_v49  ;;  %v937_v51 = vsel %vm924_vm6, %v1453_v48, 0.0  ;;  %v944_v52 = vpack.c.bf16 %v1453_v48, %v1453_v48 }
 0x4f0   : > { %938 = vadd.xlane.f32.xlu1 %v937_v51  ;;  %1369 = vmatmul.mubr.msk.bf16.vlgmr.msra.gmra.mrb[20].mxu1 %vm924_vm6, %v945_v50 }
 0x4f1   : > { %1363 = vmatmul.mubr.msk.bf16.vlgmr.msra.gmra.mrb[16].mxu0 %vm924_vm6, %v944_v52  ;;  %1380 = vmatprep.mubr.msk.bf16.mxu1 %vm1523_vm0, %v1522_v1 }
 0x4f2   : > { %1374 = vmatprep.mubr.msk.bf16.mxu0 %vm1523_vm0, %v1522_v1  ;;  %1373 = vmatpush3.bf16.msra.mxu0 %v1444_v53 }
 0x4f3   : > { %1379 = vmatpush3.bf16.msra.mxu1 %v1445_v54 }
 0x57c   : > { %v942_v55 = vpop.xlane.xlu0 %941 }
 0x57d   : > { %v939_v56 = vpop.xlane.xlu1 %938  ;;  %1454 = vrcp.f32 %v942_v55 }
 0x57e   : > { %1456 = vrcp.f32 %v939_v56 }
 0x587   : > { %v1455_v57 = vpop.eup %1454 }
 0x588   : > { %v1457_v59 = vpop.eup %1456 }
 0x5c3   : > { %v1030_v58 = vpop.f32.mrb[20].mxu1 }
 0x5c4   : > { %v987_v60 = vpop.f32.mrb[16].mxu0  ;;  %v1039_v1 = vmul.f32 %v1455_v57, %v1030_v58  ;;  %v1370_v61 = vpop.f32.mrb[21].mxu1 }
 0x5c5   : > { %v1038_v62 = vmul.f32 %v1457_v59, %v987_v60  ;;  %v1364_v63 = vpop.f32.mrb[17].mxu0  ;;  %v1033_v0 = vpop.f32.mrb[22].mxu1 }
 0x5c6   : > { %v1041_v2 = vpack.c.bf16 %v1039_v1, %v1039_v1  ;;  %v990_v3 = vpop.f32.mrb[18].mxu0  ;;  %v1371_v4 = vpop.f32.mrb[23].mxu1 }
 0x5c7   : > { %v1040_v5 = vpack.c.bf16 %v1038_v62, %v1038_v62  ;;  %v1365_v6 = vpop.f32.mrb[19].mxu0 }
 0x5c8   : > { %1381 = vmatmul.mubr.msk.bf16.vlgmr.msra.gmra.mrb[24].mxu1 %vm438_vm2, %v1041_v2 }
 0x5c9   : > { %1375 = vmatmul.mubr.msk.bf16.vlgmr.msra.gmra.mrb[20].mxu0 %vm438_vm2, %v1040_v5 }
 0x69b   : > { %v1138_v7 = vpop.f32.mrb[24].mxu1 }
 0x69c   : > { %v1089_v8 = vpop.f32.mrb[20].mxu0  ;;  %v1145_v9 = vsel %vm392_vm1, %v1138_v7, 0.0  ;;  %v1382_v10 = vpop.f32.mrb[25].mxu1 }
 0x69d   : > { %v1144_v11 = vsel %vm392_vm1, %v1089_v8, 0.0  ;;  %v1376_v12 = vpop.f32.mrb[21].mxu0  ;;  %v1141_v14 = vpop.f32.mrb[26].mxu1 }
 0x69e   : > { %v1146_v15 = vadd.f32 %v1145_v9, %v1144_v11  ;;  %v1092_v16 = vpop.f32.mrb[22].mxu0  ;;  %v1383_v17 = vpop.f32.mrb[27].mxu1 }
 0x69f   : > { %v1377_v18 = vpop.f32.mrb[23].mxu0 }
 0x6a0   : > { %1147 = vst.msk [vmem:[%s363_s30] sm:$0xff] %vm392_vm1, %v1146_v15 }
 0x6a1   : > { %1471 = shalt.err (!%p1468_p3)
}
 0x6a2   : > { %s1472_s18 = scalar_lea.hbm %s1766_s28, 128  ;;  %s1476_s26 = scalar_lea.hbm %s1819_s10, 256 }
 0x6a3   : > { %p1473_p4 = scmp.ne.s32.totalorder %s1766_s28, %s1472_s18  ;;  %p1477_p9 = scmp.lt.u32.totalorder %s1766_s28, %s1819_s10 }
 0x6a4   : > { %p1478_p10 = scmp.lt.u32.totalorder %s1476_s26, %s1472_s18  ;;  %p1480_p12 = scmp.lt.u32.totalorder %s1472_s18, %s1766_s28 }
 0x6a5   : > { %p1474_p7 = pnand %p1473_p4, %p1622_p5 }
 0x6a6   : > { %p1479_p11 = por %p1478_p10, %p1477_p9 }
 0x6a7   : > { %p1475_p8 = pneg %p1474_p7 }
 0x6a8   : > { %p1481_p13 = por %p1480_p12, %p1479_p11 }
 0x6aa   : > { %p1482_p0 = pnand %p1481_p13, %p1475_p8 }
 0x6ac   : > { %1485 = shalt.err (!%p1482_p0)
}
 0x6ad   : > { %1384 = dma.vmem_to_hbm [thread:$0]  (%p1622_p5), %s1768_s25, 128, %s1766_s28, %s1149_s17  }
 0x6ae PF: > { %p1390_p1 = scmp.ge.s32.totalorder %s1520_s16, 2  ;;  %s1174_s29 = sand.u32 1, %s1508_s13  }
 0x6af   : > { %s1175_s12 = scalar_lea.sflag [#allocation3], %s1174_s29 }
 0x6b0   : > { %p1387_p2 = pnand %p1390_p1, %p1626_p6 }
 0x6b2   : > { %1503 = dma.done.wait (!%p1387_p2), %s1175_s12, 128  }
 0x6b3   : > { %1505 = vsyncadd (!%p1387_p2), %s1175_s12, 4294967168  ;;  %p20_p3 = scmp.ge.s32.totalorder %s1609_s19, 4   ;;  %s1822_s13 = smov %s1512_s14 }
 0x6b4   : > { %s1823_s14 = smov %s1516_s15  ;;  %s1824_s15 = smov %s1620_s22 }
 0x6b5   : > { %s1825_s16 = smov %s1609_s19  ;;  %22 = sbr.rel (!%p20_p3) target bundleno = 3 (0x3), region = 98 }
 0x6bc   :  { %1180 = vsyncpa [#allocation3], 1 }
 0x6bd   :  { %1182 = vsyncpa [#allocation3 + $0x1], 1 }

</bundles_post_ra>
